<compile_context>
chip_gen: v7x
topology: tpu7x:2x2x1
jax: 0.10.0
libtpu: 0.0.40
codegen_flags: <defaults>
</compile_context>

<pallas_src>
import jax
import jax.numpy as jnp
from jax.experimental import pallas as pl
from jax.experimental.pallas import tpu as pltpu

OBS_DIM = 96
ACT_DIM = 18
HID_DIM = 64
HEAD_PAD = 128        # fused head width for the lane-dense MXU matmul (cols 0..17=mean, 18=value)
TILE_B_MAX = 2048     # max batch rows per grid step
MIN_SPLIT_B = 256     # once the batch reaches this, use >= 2 grid steps (v7x megacore)


def _cdiv(a, b):
    return -(-a // b)


def _round_up(n, m):
    return ((n + m - 1) // m) * m


def _choose_tile_b(B):
    """Balanced batch tiling: roughly equal tiles, multiple of 8, <= TILE_B_MAX.

    Note: callers with varying rollout sizes should bucket B themselves to
    avoid per-batch-size recompiles (jit specializes on B regardless).
    """
    min_tiles = 2 if B >= MIN_SPLIT_B else 1
    n_tiles = max(min_tiles, _cdiv(B, TILE_B_MAX))
    return min(TILE_B_MAX, _round_up(_cdiv(B, n_tiles), 8))


def actor_critic_kernel(x_ref, w1_ref, b1_ref, w23_ref, b23_ref, mean_ref, val_ref):
    # shared: tanh(x @ W1 + b1)  -> [tile_b, 64]
    h = jnp.tanh(
        jnp.dot(x_ref[...], w1_ref[...], preferred_element_type=jnp.float32)
        + b1_ref[...]
    )
    # fused actor+critic head in a single MXU pass -> [tile_b, 128]
    y = jnp.dot(h, w23_ref[...], preferred_element_type=jnp.float32) + b23_ref[...]
    # write back only the 19 useful columns (narrow outputs, masked stores are
    # cheap here -- the kernel is HBM/DMA-bound, not store-slot-bound)
    mean_ref[...] = y[:, :ACT_DIM]
    val_ref[...] = y[:, ACT_DIM:ACT_DIM + 1]


def fuse_head_params(params):
    """Build the fused / lane-padded parameter set (do this once, host-side)."""
    w1, b1, w2, b2, w3, b3, logstd = params
    w23 = jnp.zeros((HID_DIM, HEAD_PAD), jnp.float32)
    w23 = w23.at[:, :ACT_DIM].set(w2)
    w23 = w23.at[:, ACT_DIM:ACT_DIM + 1].set(w3)
    b23 = jnp.zeros((1, HEAD_PAD), jnp.float32)
    b23 = b23.at[:, :ACT_DIM].set(b2)
    b23 = b23.at[:, ACT_DIM:ACT_DIM + 1].set(b3)
    return (w1, b1, w23, b23, logstd)


@jax.jit
def actor_critic_forward(x, fused_params):
    w1, b1, w23, b23, logstd = fused_params
    B = x.shape[0]

    tile_b = _choose_tile_b(B)
    num_tiles = _cdiv(B, tile_b)

    mean, value = pl.pallas_call(
        actor_critic_kernel,
        out_shape=(
            jax.ShapeDtypeStruct((B, ACT_DIM), jnp.float32),
            jax.ShapeDtypeStruct((B, 1), jnp.float32),
        ),
        grid=(num_tiles,),
        in_specs=[
            # streamed per-tile activations (ragged last tile clipped by Pallas)
            pl.BlockSpec((tile_b, OBS_DIM), lambda i: (i, 0)),
            # resident weights / biases (same block every step -> no re-DMA)
            pl.BlockSpec((OBS_DIM, HID_DIM), lambda i: (0, 0)),
            pl.BlockSpec((1, HID_DIM), lambda i: (0, 0)),
            pl.BlockSpec((HID_DIM, HEAD_PAD), lambda i: (0, 0)),
            pl.BlockSpec((1, HEAD_PAD), lambda i: (0, 0)),
        ],
        out_specs=(
            pl.BlockSpec((tile_b, ACT_DIM), lambda i: (i, 0)),
            pl.BlockSpec((tile_b, 1), lambda i: (i, 0)),
        ),
        compiler_params=pltpu.CompilerParams(
            dimension_semantics=("parallel",),
            vmem_limit_bytes=32 << 20,
        ),
    )(x, w1, b1, w23, b23)

    std = jnp.exp(logstd[0])                    # [act_dim], batch-independent
    return mean, std, value


def init_params(key):
    """Deterministic init mimicking torch.nn.Linear defaults (U(-1/sqrt(in), 1/sqrt(in)))."""
    k1, k2, k3, k4, k5, k6 = jax.random.split(key, 6)

    def lin(kw, kb, fan_in, fan_out):
        bound = 1.0 / jnp.sqrt(jnp.float32(fan_in))
        w = jax.random.uniform(kw, (fan_in, fan_out), jnp.float32, -bound, bound)
        b = jax.random.uniform(kb, (1, fan_out), jnp.float32, -bound, bound)
        return w, b

    w1, b1 = lin(k1, k2, OBS_DIM, HID_DIM)
    w2, b2 = lin(k3, k4, HID_DIM, ACT_DIM)
    w3, b3 = lin(k5, k6, HID_DIM, 1)
    logstd = jnp.zeros((1, ACT_DIM), jnp.float32)  # nn.Parameter(torch.zeros(act_dim))
    return (w1, b1, w2, b2, w3, b3, logstd)


def reference_forward(x, params):
    w1, b1, w2, b2, w3, b3, logstd = params
    h = jnp.tanh(x @ w1 + b1)
    return h @ w2 + b2, jnp.exp(logstd[0]), h @ w3 + b3


if __name__ == "__main__":
    key = jax.random.PRNGKey(0)
    pkey, xkey = jax.random.split(key)
    params = init_params(pkey)
    fused_params = fuse_head_params(params)

    # small batch (single tile path)
    B = 8
    x = jax.random.normal(xkey, (B, OBS_DIM), jnp.float32)
    mean, std, value = jax.block_until_ready(actor_critic_forward(x, fused_params))

    ref_mean, ref_std, ref_value = reference_forward(x, params)
    assert mean.shape == (B, ACT_DIM) and std.shape == (ACT_DIM,) and value.shape == (B, 1)
    assert jnp.allclose(mean, ref_mean, atol=1e-5, rtol=1e-5)
    assert jnp.allclose(std, ref_std, atol=1e-6, rtol=1e-6)
    assert jnp.allclose(value, ref_value, atol=1e-5, rtol=1e-5)

    # larger batch that exercises the multi-tile + ragged-last-block path
    # (B=300 -> 2 balanced tiles of 152 rows, second one clipped to 148)
    B2 = 300
    x2 = jax.random.normal(jax.random.PRNGKey(1), (B2, OBS_DIM), jnp.float32)
    mean2, std2, value2 = jax.block_until_ready(actor_critic_forward(x2, fused_params))
    ref_mean2, ref_std2, ref_value2 = reference_forward(x2, params)
    assert mean2.shape == (B2, ACT_DIM) and value2.shape == (B2, 1)
    assert jnp.allclose(mean2, ref_mean2, atol=1e-5, rtol=1e-5)
    assert jnp.allclose(std2, ref_std2, atol=1e-6, rtol=1e-6)
    assert jnp.allclose(value2, ref_value2, atol=1e-5, rtol=1e-5)

    print("KERNEL_OK")
</pallas_src>

<mosaic_0001>
module attributes {stable_mosaic.version = 11 : i64} {
  func.func @actor_critic_kernel(%arg0: i32, %arg1: memref<8x96xf32, #tpu.memory_space<vmem>>, %arg2: memref<96x64xf32, #tpu.memory_space<vmem>>, %arg3: memref<1x64xf32, #tpu.memory_space<vmem>>, %arg4: memref<64x128xf32, #tpu.memory_space<vmem>>, %arg5: memref<1x128xf32, #tpu.memory_space<vmem>>, %arg6: memref<8x18xf32, #tpu.memory_space<vmem>>, %arg7: memref<8x1xf32, #tpu.memory_space<vmem>>) attributes {dimension_semantics = [#tpu.dimension_semantics<parallel>], iteration_bounds = array<i64: 1>, scalar_prefetch = 0 : i64, scratch_operands = 0 : i64, tpu.core_type = #tpu.core_type<tc>, window_params = [{transform_indices = @transform_0, window_bounds = array<i64: 8, 96>}, {pipeline_mode = #tpu.pipeline_mode<synchronous>, transform_indices = @transform_1, window_bounds = array<i64: 96, 64>}, {pipeline_mode = #tpu.pipeline_mode<synchronous>, transform_indices = @transform_2, window_bounds = array<i64: 1, 64>}, {pipeline_mode = #tpu.pipeline_mode<synchronous>, transform_indices = @transform_3, window_bounds = array<i64: 64, 128>}, {pipeline_mode = #tpu.pipeline_mode<synchronous>, transform_indices = @transform_4, window_bounds = array<i64: 1, 128>}, {transform_indices = @transform_5, window_bounds = array<i64: 8, 18>}, {transform_indices = @transform_6, window_bounds = array<i64: 8, 1>}]} {
    %c0 = arith.constant 0 : index
    %c0_0 = arith.constant 0 : index
    %0 = vector.load %arg1[%c0, %c0_0] : memref<8x96xf32, #tpu.memory_space<vmem>>, vector<8x96xf32>
    %c0_1 = arith.constant 0 : index
    %c0_2 = arith.constant 0 : index
    %1 = vector.load %arg2[%c0_1, %c0_2] : memref<96x64xf32, #tpu.memory_space<vmem>>, vector<96x64xf32>
    %cst = arith.constant dense<0.000000e+00> : vector<8x64xf32>
    %2 = tpu.matmul %0, %1, %cst {dimension_numbers = #tpu.dot_dimension_numbers<[1], [0], [0], [1], [0, 0, 1, 1], [], []>} : vector<8x96xf32>, vector<96x64xf32>, vector<8x64xf32> -> vector<8x64xf32>
    %c0_3 = arith.constant 0 : index
    %c0_4 = arith.constant 0 : index
    %3 = vector.load %arg3[%c0_3, %c0_4] : memref<1x64xf32, #tpu.memory_space<vmem>>, vector<1x64xf32>
    %4 = vector.broadcast %3 : vector<1x64xf32> to vector<8x64xf32>
    %5 = arith.addf %2, %4 : vector<8x64xf32>
    %6 = math.tanh %5 : vector<8x64xf32>
    %c0_5 = arith.constant 0 : index
    %c0_6 = arith.constant 0 : index
    %7 = vector.load %arg4[%c0_5, %c0_6] : memref<64x128xf32, #tpu.memory_space<vmem>>, vector<64x128xf32>
    %cst_7 = arith.constant dense<0.000000e+00> : vector<8x128xf32>
    %8 = tpu.matmul %6, %7, %cst_7 {dimension_numbers = #tpu.dot_dimension_numbers<[1], [0], [0], [1], [0, 0, 1, 1], [], []>} : vector<8x64xf32>, vector<64x128xf32>, vector<8x128xf32> -> vector<8x128xf32>
    %c0_8 = arith.constant 0 : index
    %c0_9 = arith.constant 0 : index
    %9 = vector.load %arg5[%c0_8, %c0_9] : memref<1x128xf32, #tpu.memory_space<vmem>>, vector<1x128xf32>
    %10 = vector.broadcast %9 : vector<1x128xf32> to vector<8x128xf32>
    %11 = arith.addf %8, %10 : vector<8x128xf32>
    %12 = vector.extract_strided_slice %11 {offsets = [0, 0], sizes = [8, 18], strides = [1, 1]} : vector<8x128xf32> to vector<8x18xf32>
    %c0_10 = arith.constant 0 : index
    %c0_11 = arith.constant 0 : index
    %13 = vector.load %arg6[%c0_10, %c0_11] : memref<8x18xf32, #tpu.memory_space<vmem>>, vector<8x18xf32>
    tpu.vector_store %arg6[%c0_10, %c0_11], %12 {strides = array<i32>} : memref<8x18xf32, #tpu.memory_space<vmem>>, vector<8x18xf32>,
    %14 = vector.extract_strided_slice %11 {offsets = [0, 18], sizes = [8, 1], strides = [1, 1]} : vector<8x128xf32> to vector<8x1xf32>
    %c0_12 = arith.constant 0 : index
    %c0_13 = arith.constant 0 : index
    %15 = vector.load %arg7[%c0_12, %c0_13] : memref<8x1xf32, #tpu.memory_space<vmem>>, vector<8x1xf32>
    tpu.vector_store %arg7[%c0_12, %c0_13], %14 {strides = array<i32>} : memref<8x1xf32, #tpu.memory_space<vmem>>, vector<8x1xf32>,
    return
  }
  func.func @transform_0(%arg0: i32) -> (i32, i32) {
    %c0_i32 = arith.constant 0 : i32
    %c0_i32_0 = arith.constant 0 : i32
    return %arg0, %c0_i32 : i32, i32
  }
  func.func @transform_1(%arg0: i32) -> (i32, i32) {
    %c0_i32 = arith.constant 0 : i32
    %c0_i32_0 = arith.constant 0 : i32
    %c0_i32_1 = arith.constant 0 : i32
    return %c0_i32, %c0_i32_0 : i32, i32
  }
  func.func @transform_2(%arg0: i32) -> (i32, i32) {
    %c0_i32 = arith.constant 0 : i32
    %c0_i32_0 = arith.constant 0 : i32
    %c0_i32_1 = arith.constant 0 : i32
    return %c0_i32, %c0_i32_0 : i32, i32
  }
  func.func @transform_3(%arg0: i32) -> (i32, i32) {
    %c0_i32 = arith.constant 0 : i32
    %c0_i32_0 = arith.constant 0 : i32
    %c0_i32_1 = arith.constant 0 : i32
    return %c0_i32, %c0_i32_0 : i32, i32
  }
  func.func @transform_4(%arg0: i32) -> (i32, i32) {
    %c0_i32 = arith.constant 0 : i32
    %c0_i32_0 = arith.constant 0 : i32
    %c0_i32_1 = arith.constant 0 : i32
    return %c0_i32, %c0_i32_0 : i32, i32
  }
  func.func @transform_5(%arg0: i32) -> (i32, i32) {
    %c0_i32 = arith.constant 0 : i32
    %c0_i32_0 = arith.constant 0 : i32
    return %arg0, %c0_i32 : i32, i32
  }
  func.func @transform_6(%arg0: i32) -> (i32, i32) {
    %c0_i32 = arith.constant 0 : i32
    %c0_i32_0 = arith.constant 0 : i32
    return %arg0, %c0_i32 : i32, i32
  }
}

</mosaic_0001>

<bundles_post_ra>
// kernel: actor_critic_forward.1
= control target key start
LH: loop header
LB: loop body
LE: loop exit
PB: predicated region body
PF: predicated region fallthrough
CT: control target
= control target key end

     0   :  { %v366_v3 = vmov 0.0|0.0   ;;  %vm367_vm0 = vmmov 0   ;;  %v368_v6 = vmov 0.0   ;;  %s490_s0 = inlined_call_operand.vmem [shape: f32[8,96], index: 0, kind: input, shape index: {}]   ;;  %s491_s1 = inlined_call_operand.vmem [shape: f32[96,64], index: 1, kind: input, shape index: {}]   ;;  %s492_s2 = inlined_call_operand.vmem [shape: f32[1,64], index: 2, kind: input, shape index: {}]   ;;  %s493_s3 = inlined_call_operand.vmem [shape: f32[64,128], index: 3, kind: input, shape index: {}]   ;;  %s494_s4 = inlined_call_operand.vmem [shape: f32[1,128], index: 4, kind: input, shape index: {}]   ;;  %s495_s5 = inlined_call_operand.hbm [shape: f32[8,18], index: 5, kind: output, shape index: {0}]   ;;  %s496_s6 = inlined_call_operand.vmem [shape: f32[8,1], index: 6, kind: output, shape index: {1}]  }
   0x1   :  { %v24_v0 = vld [vmem:[%s491_s1] sm:$0xff]  ;;  %v25_v1 = vld [vmem:[%s491_s1 + $0x8] sm:$0xff]  ;;  %v26_v2 = vld [vmem:[%s491_s1 + $0x10] sm:$0xff]  ;;  %305 = vmatprep.subr.bf16.mxu0 %v366_v3  ;;  %283 = vmatprep.mubr.msk.f32.mxu0 %vm367_vm0, %v368_v6 }
   0x2   :  { %v306_v4 = vpack.c.bf16 %v25_v1, %v24_v0  ;;  %v27_v5 = vld [vmem:[%s491_s1 + $0x18] sm:$0xff]  ;;  %323 = vmatprep.subr.bf16.mxu1 %v366_v3  ;;  %302 = vmatprep.mubr.msk.f32.mxu1 %vm367_vm0, %v368_v6  ;;  %v28_v8 = vld [vmem:[%s491_s1 + $0x20] sm:$0xff]  ;;  %v29_v9 = vld [vmem:[%s491_s1 + $0x28] sm:$0xff] }
   0x3   :  { %v309_v7 = vpack.c.bf16 %v27_v5, %v26_v2  ;;  %v118_v10 = vld [vmem:[%s493_s3] sm:$0xff]  ;;  %v119_v11 = vld [vmem:[%s493_s3 + $0x8] sm:$0xff] }
   0x4   :  { %307 = vmatpush3.bf16.msra.mxu0 %v306_v4  ;;  %v324_v12 = vpack.c.bf16 %v119_v11, %v118_v10 }
   0x5   :  { %308 = vmatprep.subr.bf16.mxu0 %v366_v3 }
   0x6   :  { %12 = vsyncpa [#allocation3], 0  ;;  %v312_v13 = vpack.c.bf16 %v29_v9, %v28_v8  ;;  %325 = vmatpush3.bf16.msra.mxu1 %v324_v12  ;;  %v30_v14 = vld [vmem:[%s491_s1 + $0x30] sm:$0xff]  ;;  %v31_v15 = vld [vmem:[%s491_s1 + $0x38] sm:$0xff]  ;;  %vm43_vm1 = vcmask 785408   ;;  %vm133_vm2 = vcmask 523264  }
   0x7   :  { %326 = vmatprep.subr.bf16.mxu1 %v366_v3  ;;  %v315_v16 = vpack.c.bf16 %v31_v15, %v30_v14  ;;  %v32_v17 = vld [vmem:[%s491_s1 + $0x40] sm:$0xff]  ;;  %v33_v18 = vld [vmem:[%s491_s1 + $0x48] sm:$0xff]  ;;  %v34_v20 = vld [vmem:[%s491_s1 + $0x50] sm:$0xff]  ;;  %vm207_vm3 = vcmask 146432   ;;  %s370_s18 = smov 110  }
   0x8   :  { %310 = vmatpush3.bf16.msra.mxu0 %v309_v7  ;;  %v318_v19 = vpack.c.bf16 %v33_v18, %v32_v17  ;;  %v35_v21 = vld [vmem:[%s491_s1 + $0x58] sm:$0xff]  ;;  %v23_v23 = vld [vmem:[%s490_s0] sm:$0xff]  ;;  %v120_v24 = vld [vmem:[%s493_s3 + $0x10] sm:$0xff] }
   0x9   :  { %311 = vmatprep.subr.bf16.mxu0 %v366_v3  ;;  %v321_v22 = vpack.c.bf16 %v35_v21, %v34_v20  ;;  %v121_v25 = vld [vmem:[%s493_s3 + $0x18] sm:$0xff]  ;;  %v122_v27 = vld [vmem:[%s493_s3 + $0x20] sm:$0xff]  ;;  %v123_v28 = vld [vmem:[%s493_s3 + $0x28] sm:$0xff] }
   0xa   :  { %v327_v26 = vpack.c.bf16 %v121_v25, %v120_v24  ;;  %v330_v29 = vpack.c.bf16 %v123_v28, %v122_v27  ;;  %v124_v30 = vld [vmem:[%s493_s3 + $0x30] sm:$0xff]  ;;  %v125_v31 = vld [vmem:[%s493_s3 + $0x38] sm:$0xff]  ;;  %v233_v33 = vld [vmem:[%s492_s2] ss:$0 sm:$0xff]  ;;  %s369_s3 = smov [#allocation2]  }
   0xb   :  { %v333_v32 = vpack.c.bf16 %v125_v31, %v124_v30  ;;  %v235_v38 = vld [vmem:[%s494_s4] ss:$0 sm:$0xff]  ;;  %s221_s17 = sshll.u32 %s369_s3, 4  ;;  %s222_s17 = int_to_ptr.vmem [resolvable:$true] %s221_s17 }
   0xc   :  { %313 = vmatpush3.bf16.msra.mxu0 %v312_v13  ;;  %328 = vmatpush3.bf16.msra.mxu1 %v327_v26  ;;  %s342_s2 = scalar_lea.vmem %s222_s17, 128  ;;  %p347_p1 = scmp.lt.s32.totalorder %s222_s17, %s222_s17 }
   0xd   :  { %314 = vmatprep.subr.bf16.mxu0 %v366_v3  ;;  %329 = vmatprep.subr.bf16.mxu1 %v366_v3  ;;  %p343_p0 = scmp.ne.s32.totalorder %s222_s17, %s342_s2  ;;  %p348_p2 = scmp.lt.s32.totalorder %s342_s2, %s342_s2 }
   0xf   :  { %p349_p3 = por %p348_p2, %p347_p1 }
  0x10   :  { %316 = vmatpush3.bf16.msra.mxu0 %v315_v16  ;;  %331 = vmatpush3.bf16.msra.mxu1 %v330_v29 }
  0x11   :  { %317 = vmatprep.subr.bf16.mxu0 %v366_v3  ;;  %332 = vmatprep.subr.bf16.mxu1 %v366_v3  ;;  %p350_p4 = pnand %p349_p3, %p343_p0 }
  0x14   :  { %319 = vmatpush3.bf16.msra.mxu0 %v318_v19  ;;  %334 = vmatpush3.bf16.msra.mxu1 %v333_v32 }
  0x15   :  { %320 = vmatprep.subr.bf16.mxu0 %v366_v3 }
  0x18   :  { %322 = vmatpush3.bf16.msra.mxu0 %v321_v22 }
  0x1b   :  { %284 = vmatmul.mubr.msk.f32.vlgmr.msra.gmra.mrb[0].mxu0 %vm43_vm1, %v23_v23 }
  0xee   :  { %v113_v34 = vpop.f32.mrb[0].mxu0 }
  0xef   :  { %v114_v35 = vadd.f32 %v233_v33, %v113_v34  ;;  %v285_v36 = vpop.f32.mrb[1].mxu0 }
  0xf1   :  { %340 = vtanh.f32 %v114_v35 }
  0xfb   :  { %v341_v37 = vpop.eup %340 }
  0xfc   :  { %303 = vmatmul.mubr.msk.f32.vlgmr.msra.gmra.mrb[0].mxu1 %vm133_vm2, %v341_v37 }
 0x1cf   :  { %v203_v39 = vpop.f32.mrb[0].mxu1 }
 0x1d0   :  { %v204_v40 = vadd.f32 %v235_v38, %v203_v39  ;;  %v304_v41 = vpop.f32.mrb[1].mxu1 }
 0x1d2   :  { %210 = vrot.lane.b32.xlu0 %v204_v40, %s370_s18  ;;  %208 = vst.msk [vmem:[#allocation2] sm:$0xff] %vm207_vm3, %v204_v40 }
 0x1d3   :  { %353 = shalt.err (!%p350_p4)
}
 0x1d4   :  { %s354_s4 = scalar_lea.hbm %s495_s5, 128 }
 0x1d5   :  { %p355_p5 = scmp.ne.s32.totalorder %s495_s5, %s354_s4  ;;  %p358_p6 = scmp.lt.u32.totalorder %s354_s4, %s495_s5 }
 0x1d7   :  { %p360_p7 = pnand %p358_p6, %p355_p5 }
 0x1d9   :  { %363 = shalt.err (!%p360_p7)
}
 0x1da   :  { %224 = dma.vmem_to_hbm [thread:$0]  %s222_s17, 128, %s495_s5, [#allocation3]   ;;  %vm213_vm4 = vcmask 7168  }
 0x244   :  { %v211_v42 = vpop.permute.xlu0 %210 }
 0x245   :  { %214 = vst.msk [vmem:[%s496_s6] sm:$0xff] %vm213_vm4, %v211_v42 }
 0x246   :  { %364 = dma.done.wait [#allocation3], 128  }
 0x247   :  { %365 = vsyncadd [#allocation3], 4294967168 }
 0x248   :  { %232 = vsyncpa [#allocation3], 1 }

</bundles_post_ra>
